<compile_context>
chip_gen: v6e
topology: v6e:2x2x1
jax: 0.10.0
libtpu: 0.0.40
codegen_flags: <defaults>
</compile_context>

<pallas_src>
import functools

import jax
import jax.numpy as jnp
from jax.experimental import pallas as pl
from jax.experimental.pallas import tpu as pltpu

K_IN = 784          # 28 * 28
C_OUT = 10
C_PAD = 128         # lane-dense class dim for the final matmul


def _round_up(x, m):
    return (x + m - 1) // m * m


def mlp_kernel(x_ref, w1_ref, b1_ref, w2_ref, b2_ref, w3_ref, b3_ref,
               w4_ref, b4_ref, out_ref):
    # fc1 + ReLU (bf16 operands, f32 accumulate; dropout = identity in eval).
    # Cast x to bf16 in-kernel so HBM reads stay a single f32 pass.
    x = x_ref[...].astype(jnp.bfloat16)
    h = jnp.dot(x, w1_ref[...], preferred_element_type=jnp.float32)
    h = jnp.maximum(h + b1_ref[...], 0.0)
    # fc2 + ReLU
    h = jnp.dot(h.astype(jnp.bfloat16), w2_ref[...],
                preferred_element_type=jnp.float32)
    h = jnp.maximum(h + b2_ref[...], 0.0)
    # fc3 + ReLU
    h = jnp.dot(h.astype(jnp.bfloat16), w3_ref[...],
                preferred_element_type=jnp.float32)
    h = jnp.maximum(h + b3_ref[...], 0.0)
    # fc4 (logits, padded to 128 lane-dense classes)
    logits = jnp.dot(h.astype(jnp.bfloat16), w4_ref[...],
                     preferred_element_type=jnp.float32)
    logits = logits + b4_ref[...]
    # Mask padded class columns so they contribute nothing to the lse.
    # (Python float literal -> jaxpr literal, not a captured constant.)
    col = jax.lax.broadcasted_iota(jnp.int32, logits.shape, 1)
    logits = jnp.where(col < C_OUT, logits, -1e30)
    # numerically-stable log_softmax over the class axis
    m = jnp.max(logits, axis=-1, keepdims=True)
    shifted = logits - m
    lse = jnp.log(jnp.sum(jnp.exp(shifted), axis=-1, keepdims=True))
    out_ref[...] = (shifted - lse)[:, :C_OUT]


@functools.partial(jax.jit, static_argnames=("block_b",))
def classifier_forward(x_nchw, params, *, block_b=1024):
    """x_nchw: [B, 1, 28, 28] float32 -> log-probs [B, 10] float32."""
    B = x_nchw.shape[0]
    w1, b1, w2, b2, w3, b3, w4, b4 = params

    # Flatten only (same as torch .view); no cast/pad passes in the wrapper.
    x2d = x_nchw.reshape(B, K_IN)

    # Batch tiling: 8-aligned tiles, no batch padding (ragged last block is
    # handled by Pallas; rows are independent and tail stores are masked).
    # Aim for >= 4 grid steps when the batch permits so each v7x TensorCore
    # gets >= 2 steps and DMA prefetch overlaps compute.
    bp8 = _round_up(B, 8)
    tb = min(block_b, bp8)
    if bp8 >= 32 and pl.cdiv(bp8, tb) < 4:
        tb = max(8, _round_up(pl.cdiv(bp8, 4), 8))
    grid = (pl.cdiv(B, tb),)

    # Weights stored (in_features, out_features) in bf16; biases stay f32.
    w1p = w1.astype(jnp.bfloat16)
    w2p = w2.astype(jnp.bfloat16)
    w3p = w3.astype(jnp.bfloat16)
    w4p = jnp.pad(w4, ((0, 0), (0, C_PAD - C_OUT))).astype(jnp.bfloat16)
    b4p = jnp.pad(b4, ((0, 0), (0, C_PAD - C_OUT)))

    def full_spec(arr):
        nd = arr.ndim
        return pl.BlockSpec(arr.shape, lambda i, nd=nd: (0,) * nd)

    weight_bytes = 2 * (784 * 256 + 256 * 128 + 128 * 64 + 64 * C_PAD)
    bias_bytes = 4 * (256 + 128 + 64 + C_PAD)
    cost = pl.CostEstimate(
        flops=2 * B * (784 * 256 + 256 * 128 + 128 * 64 + 64 * 10),
        transcendentals=B * (C_OUT + 1),
        bytes_accessed=B * (K_IN * 4 + C_OUT * 4) + weight_bytes + bias_bytes,
    )

    out = pl.pallas_call(
        mlp_kernel,
        out_shape=jax.ShapeDtypeStruct((B, C_OUT), jnp.float32),
        grid=grid,
        in_specs=[
            pl.BlockSpec((tb, K_IN), lambda i: (i, 0)),   # x tile (f32)
            full_spec(w1p), full_spec(b1),
            full_spec(w2p), full_spec(b2),
            full_spec(w3p), full_spec(b3),
            full_spec(w4p), full_spec(b4p),
        ],
        out_specs=pl.BlockSpec((tb, C_OUT), lambda i: (i, 0)),
        compiler_params=pltpu.CompilerParams(
            dimension_semantics=("parallel",)),
        cost_estimate=cost,
    )(x2d, w1p, b1, w2p, b2, w3p, b3, w4p, b4p)

    return out


def init_params(key):
    """Deterministic init matching PyTorch Linear's U(-1/sqrt(in), 1/sqrt(in)).

    Weights are stored as (in_features, out_features)."""
    dims = [(784, 256), (256, 128), (128, 64), (64, 10)]
    params = []
    for (fan_in, fan_out) in dims:
        key, kw, kb = jax.random.split(key, 3)
        bound = 1.0 / jnp.sqrt(fan_in)
        w = jax.random.uniform(kw, (fan_in, fan_out), jnp.float32,
                               minval=-bound, maxval=bound)
        b = jax.random.uniform(kb, (1, fan_out), jnp.float32,
                               minval=-bound, maxval=bound)
        params += [w, b]
    return tuple(params)


def reference_forward(x_nchw, params):
    """Pure-JAX reference using the same bf16-operand / f32-accumulate path."""
    w1, b1, w2, b2, w3, b3, w4, b4 = params

    def lin(a, w, b):
        return jnp.dot(a.astype(jnp.bfloat16), w.astype(jnp.bfloat16),
                       preferred_element_type=jnp.float32) + b

    x = x_nchw.reshape(x_nchw.shape[0], -1)
    h = jnp.maximum(lin(x, w1, b1), 0.0)
    h = jnp.maximum(lin(h, w2, b2), 0.0)
    h = jnp.maximum(lin(h, w3, b3), 0.0)
    logits = lin(h, w4, b4)
    return jax.nn.log_softmax(logits, axis=1)


if __name__ == "__main__":
    key = jax.random.PRNGKey(0)
    k_params, k_x = jax.random.split(key)

    params = init_params(k_params)
    # Small deterministic Fashion-MNIST-shaped batch: [B, 1, 28, 28]
    B = 8
    x = jax.random.normal(k_x, (B, 1, 28, 28), jnp.float32)

    out = classifier_forward(x, params)
    out = jax.block_until_ready(out)

    ref = reference_forward(x, params)
    assert out.shape == (B, 10)
    assert bool(jnp.all(jnp.isfinite(out))), "non-finite log-probs"
    assert jnp.allclose(out, ref, atol=2e-2, rtol=2e-2), "mismatch vs reference"
    # rows of log-probs should exp-sum to 1
    assert jnp.allclose(jnp.exp(out).sum(axis=1), 1.0, atol=1e-3)

    print("KERNEL_OK")
</pallas_src>

<mosaic_0001>
module attributes {stable_mosaic.version = 11 : i64} {
  func.func @mlp_kernel(%arg0: i32, %arg1: memref<8x784xf32, #tpu.memory_space<vmem>>, %arg2: memref<784x256xbf16, #tpu.memory_space<vmem>>, %arg3: memref<1x256xf32, #tpu.memory_space<vmem>>, %arg4: memref<256x128xbf16, #tpu.memory_space<vmem>>, %arg5: memref<1x128xf32, #tpu.memory_space<vmem>>, %arg6: memref<128x64xbf16, #tpu.memory_space<vmem>>, %arg7: memref<1x64xf32, #tpu.memory_space<vmem>>, %arg8: memref<64x128xbf16, #tpu.memory_space<vmem>>, %arg9: memref<1x128xf32, #tpu.memory_space<vmem>>, %arg10: memref<8x10xf32, #tpu.memory_space<vmem>>) attributes {dimension_semantics = [#tpu.dimension_semantics<parallel>], iteration_bounds = array<i64: 1>, scalar_prefetch = 0 : i64, scratch_operands = 0 : i64, tpu.core_type = #tpu.core_type<tc>, window_params = [{transform_indices = @transform_0, window_bounds = array<i64: 8, 784>}, {pipeline_mode = #tpu.pipeline_mode<synchronous>, transform_indices = @transform_1, window_bounds = array<i64: 784, 256>}, {pipeline_mode = #tpu.pipeline_mode<synchronous>, transform_indices = @transform_2, window_bounds = array<i64: 1, 256>}, {pipeline_mode = #tpu.pipeline_mode<synchronous>, transform_indices = @transform_3, window_bounds = array<i64: 256, 128>}, {pipeline_mode = #tpu.pipeline_mode<synchronous>, transform_indices = @transform_4, window_bounds = array<i64: 1, 128>}, {pipeline_mode = #tpu.pipeline_mode<synchronous>, transform_indices = @transform_5, window_bounds = array<i64: 128, 64>}, {pipeline_mode = #tpu.pipeline_mode<synchronous>, transform_indices = @transform_6, window_bounds = array<i64: 1, 64>}, {pipeline_mode = #tpu.pipeline_mode<synchronous>, transform_indices = @transform_7, window_bounds = array<i64: 64, 128>}, {pipeline_mode = #tpu.pipeline_mode<synchronous>, transform_indices = @transform_8, window_bounds = array<i64: 1, 128>}, {transform_indices = @transform_9, window_bounds = array<i64: 8, 10>}]} {
    %c0 = arith.constant 0 : index
    %c0_0 = arith.constant 0 : index
    %0 = vector.load %arg1[%c0, %c0_0] : memref<8x784xf32, #tpu.memory_space<vmem>>, vector<8x784xf32>
    %1 = arith.truncf %0 : vector<8x784xf32> to vector<8x784xbf16>
    %c0_1 = arith.constant 0 : index
    %c0_2 = arith.constant 0 : index
    %2 = vector.load %arg2[%c0_1, %c0_2] : memref<784x256xbf16, #tpu.memory_space<vmem>>, vector<784x256xbf16>
    %cst = arith.constant dense<0.000000e+00> : vector<8x256xf32>
    %3 = tpu.matmul %1, %2, %cst {dimension_numbers = #tpu.dot_dimension_numbers<[1], [0], [0], [1], [0, 0, 1, 1], [], []>} : vector<8x784xbf16>, vector<784x256xbf16>, vector<8x256xf32> -> vector<8x256xf32>
    %c0_3 = arith.constant 0 : index
    %c0_4 = arith.constant 0 : index
    %4 = vector.load %arg3[%c0_3, %c0_4] : memref<1x256xf32, #tpu.memory_space<vmem>>, vector<1x256xf32>
    %5 = vector.broadcast %4 : vector<1x256xf32> to vector<8x256xf32>
    %6 = arith.addf %3, %5 : vector<8x256xf32>
    %cst_5 = arith.constant 0.000000e+00 : f32
    %7 = vector.broadcast %cst_5 : f32 to vector<8x256xf32>
    %8 = arith.maximumf %6, %7 : vector<8x256xf32>
    %9 = arith.truncf %8 : vector<8x256xf32> to vector<8x256xbf16>
    %c0_6 = arith.constant 0 : index
    %c0_7 = arith.constant 0 : index
    %10 = vector.load %arg4[%c0_6, %c0_7] : memref<256x128xbf16, #tpu.memory_space<vmem>>, vector<256x128xbf16>
    %cst_8 = arith.constant dense<0.000000e+00> : vector<8x128xf32>
    %11 = tpu.matmul %9, %10, %cst_8 {dimension_numbers = #tpu.dot_dimension_numbers<[1], [0], [0], [1], [0, 0, 1, 1], [], []>} : vector<8x256xbf16>, vector<256x128xbf16>, vector<8x128xf32> -> vector<8x128xf32>
    %c0_9 = arith.constant 0 : index
    %c0_10 = arith.constant 0 : index
    %12 = vector.load %arg5[%c0_9, %c0_10] : memref<1x128xf32, #tpu.memory_space<vmem>>, vector<1x128xf32>
    %13 = vector.broadcast %12 : vector<1x128xf32> to vector<8x128xf32>
    %14 = arith.addf %11, %13 : vector<8x128xf32>
    %cst_11 = arith.constant 0.000000e+00 : f32
    %15 = vector.broadcast %cst_11 : f32 to vector<8x128xf32>
    %16 = arith.maximumf %14, %15 : vector<8x128xf32>
    %17 = arith.truncf %16 : vector<8x128xf32> to vector<8x128xbf16>
    %c0_12 = arith.constant 0 : index
    %c0_13 = arith.constant 0 : index
    %18 = vector.load %arg6[%c0_12, %c0_13] : memref<128x64xbf16, #tpu.memory_space<vmem>>, vector<128x64xbf16>
    %cst_14 = arith.constant dense<0.000000e+00> : vector<8x64xf32>
    %19 = tpu.matmul %17, %18, %cst_14 {dimension_numbers = #tpu.dot_dimension_numbers<[1], [0], [0], [1], [0, 0, 1, 1], [], []>} : vector<8x128xbf16>, vector<128x64xbf16>, vector<8x64xf32> -> vector<8x64xf32>
    %c0_15 = arith.constant 0 : index
    %c0_16 = arith.constant 0 : index
    %20 = vector.load %arg7[%c0_15, %c0_16] : memref<1x64xf32, #tpu.memory_space<vmem>>, vector<1x64xf32>
    %21 = vector.broadcast %20 : vector<1x64xf32> to vector<8x64xf32>
    %22 = arith.addf %19, %21 : vector<8x64xf32>
    %cst_17 = arith.constant 0.000000e+00 : f32
    %23 = vector.broadcast %cst_17 : f32 to vector<8x64xf32>
    %24 = arith.maximumf %22, %23 : vector<8x64xf32>
    %25 = arith.truncf %24 : vector<8x64xf32> to vector<8x64xbf16>
    %c0_18 = arith.constant 0 : index
    %c0_19 = arith.constant 0 : index
    %26 = vector.load %arg8[%c0_18, %c0_19] : memref<64x128xbf16, #tpu.memory_space<vmem>>, vector<64x128xbf16>
    %cst_20 = arith.constant dense<0.000000e+00> : vector<8x128xf32>
    %27 = tpu.matmul %25, %26, %cst_20 {dimension_numbers = #tpu.dot_dimension_numbers<[1], [0], [0], [1], [0, 0, 1, 1], [], []>} : vector<8x64xbf16>, vector<64x128xbf16>, vector<8x128xf32> -> vector<8x128xf32>
    %c0_21 = arith.constant 0 : index
    %c0_22 = arith.constant 0 : index
    %28 = vector.load %arg9[%c0_21, %c0_22] : memref<1x128xf32, #tpu.memory_space<vmem>>, vector<1x128xf32>
    %29 = vector.broadcast %28 : vector<1x128xf32> to vector<8x128xf32>
    %30 = arith.addf %27, %29 : vector<8x128xf32>
    %31 = tpu.iota {dimensions = array<i32: 1>} : vector<8x128xi32>
    %c10_i32 = arith.constant 10 : i32
    %32 = vector.broadcast %c10_i32 : i32 to vector<8x128xi32>
    %33 = arith.cmpi slt, %31, %32 : vector<8x128xi32>
    %cst_23 = arith.constant -1.000000e+30 : f32
    %34 = vector.broadcast %cst_23 : f32 to vector<8x128xf32>
    %35 = arith.select %33, %30, %34 : vector<8x128xi1>, vector<8x128xf32>
    %cst_24 = arith.constant dense<0xFF800000> : vector<8xf32>
    %36 = vector.multi_reduction <maximumf>, %35, %cst_24 [1] : vector<8x128xf32> to vector<8xf32>
    %37 = vector.shape_cast %36 : vector<8xf32> to vector<8x1xf32>
    %38 = vector.broadcast %37 : vector<8x1xf32> to vector<8x128xf32>
    %39 = arith.subf %35, %38 : vector<8x128xf32>
    %40 = math.exp %39 : vector<8x128xf32>
    %cst_25 = arith.constant dense<0.000000e+00> : vector<8xf32>
    %41 = vector.multi_reduction <add>, %40, %cst_25 [1] : vector<8x128xf32> to vector<8xf32>
    %42 = vector.shape_cast %41 : vector<8xf32> to vector<8x1xf32>
    %43 = math.log %42 : vector<8x1xf32>
    %44 = vector.broadcast %43 : vector<8x1xf32> to vector<8x128xf32>
    %45 = arith.subf %39, %44 : vector<8x128xf32>
    %46 = vector.extract_strided_slice %45 {offsets = [0, 0], sizes = [8, 10], strides = [1, 1]} : vector<8x128xf32> to vector<8x10xf32>
    %c0_26 = arith.constant 0 : index
    %c0_27 = arith.constant 0 : index
    %47 = vector.load %arg10[%c0_26, %c0_27] : memref<8x10xf32, #tpu.memory_space<vmem>>, vector<8x10xf32>
    tpu.vector_store %arg10[%c0_26, %c0_27], %46 {strides = array<i32>} : memref<8x10xf32, #tpu.memory_space<vmem>>, vector<8x10xf32>,
    return
  }
  func.func @transform_0(%arg0: i32) -> (i32, i32) {
    %c0_i32 = arith.constant 0 : i32
    %c0_i32_0 = arith.constant 0 : i32
    return %arg0, %c0_i32 : i32, i32
  }
  func.func @transform_1(%arg0: i32) -> (i32, i32) {
    %c0_i32 = arith.constant 0 : i32
    %c0_i32_0 = arith.constant 0 : i32
    %c0_i32_1 = arith.constant 0 : i32
    return %c0_i32, %c0_i32_0 : i32, i32
  }
  func.func @transform_2(%arg0: i32) -> (i32, i32) {
    %c0_i32 = arith.constant 0 : i32
    %c0_i32_0 = arith.constant 0 : i32
    %c0_i32_1 = arith.constant 0 : i32
    return %c0_i32, %c0_i32_0 : i32, i32
  }
  func.func @transform_3(%arg0: i32) -> (i32, i32) {
    %c0_i32 = arith.constant 0 : i32
    %c0_i32_0 = arith.constant 0 : i32
    %c0_i32_1 = arith.constant 0 : i32
    return %c0_i32, %c0_i32_0 : i32, i32
  }
  func.func @transform_4(%arg0: i32) -> (i32, i32) {
    %c0_i32 = arith.constant 0 : i32
    %c0_i32_0 = arith.constant 0 : i32
    %c0_i32_1 = arith.constant 0 : i32
    return %c0_i32, %c0_i32_0 : i32, i32
  }
  func.func @transform_5(%arg0: i32) -> (i32, i32) {
    %c0_i32 = arith.constant 0 : i32
    %c0_i32_0 = arith.constant 0 : i32
    %c0_i32_1 = arith.constant 0 : i32
    return %c0_i32, %c0_i32_0 : i32, i32
  }
  func.func @transform_6(%arg0: i32) -> (i32, i32) {
    %c0_i32 = arith.constant 0 : i32
    %c0_i32_0 = arith.constant 0 : i32
    %c0_i32_1 = arith.constant 0 : i32
    return %c0_i32, %c0_i32_0 : i32, i32
  }
  func.func @transform_7(%arg0: i32) -> (i32, i32) {
    %c0_i32 = arith.constant 0 : i32
    %c0_i32_0 = arith.constant 0 : i32
    %c0_i32_1 = arith.constant 0 : i32
    return %c0_i32, %c0_i32_0 : i32, i32
  }
  func.func @transform_8(%arg0: i32) -> (i32, i32) {
    %c0_i32 = arith.constant 0 : i32
    %c0_i32_0 = arith.constant 0 : i32
    %c0_i32_1 = arith.constant 0 : i32
    return %c0_i32, %c0_i32_0 : i32, i32
  }
  func.func @transform_9(%arg0: i32) -> (i32, i32) {
    %c0_i32 = arith.constant 0 : i32
    %c0_i32_0 = arith.constant 0 : i32
    return %arg0, %c0_i32 : i32, i32
  }
}

</mosaic_0001>

<bundles_post_ra>
// kernel: classifier_forward.1
= control target key start
LH: loop header
LB: loop body
LE: loop exit
PB: predicated region body
PF: predicated region fallthrough
CT: control target
= control target key end

     0   :  { %vm648_vm0 = vcmask 130048   ;;  %s2112_s0 = inlined_call_operand.vmem [shape: f32[8,784], index: 0, kind: input, shape index: {}]   ;;  %s2113_s1 = inlined_call_operand.vmem [shape: bf16[784,256], index: 1, kind: input, shape index: {}]   ;;  %s2114_s2 = inlined_call_operand.vmem [shape: f32[1,256], index: 2, kind: input, shape index: {}]   ;;  %s2115_s3 = inlined_call_operand.vmem [shape: bf16[256,128], index: 3, kind: input, shape index: {}]   ;;  %s2116_s4 = inlined_call_operand.vmem [shape: f32[1,128], index: 4, kind: input, shape index: {}]   ;;  %s2117_s5 = inlined_call_operand.vmem [shape: bf16[128,64], index: 5, kind: input, shape index: {}]   ;;  %s2118_s6 = inlined_call_operand.vmem [shape: f32[1,64], index: 6, kind: input, shape index: {}]   ;;  %s2119_s7 = inlined_call_operand.vmem [shape: bf16[64,128], index: 7, kind: input, shape index: {}]   ;;  %s2120_s8 = inlined_call_operand.vmem [shape: f32[1,128], index: 8, kind: input, shape index: {}]   ;;  %s2121_s9 = inlined_call_operand.hbm [shape: f32[8,10], index: 9, kind: output, shape index: {}]  }
   0x1   :  { %v1426_v0 = vld [vmem:[%s2113_s1 + $0x74] ss:$8 sps:$4 sm:$0xff]   ;;  %v1428_v1 = vld [vmem:[%s2113_s1 + $0x70] ss:$8 sps:$4 sm:$0xff]   ;;  %v1432_v4 = vld [vmem:[%s2113_s1 + $0x64] ss:$8 sps:$4 sm:$0xff]  }
   0x2   :  { %652 = vmatprep.subr.bf16.mxu0 %v1426_v0  ;;  %v1429_v2 = vld [vmem:[%s2113_s1 + $0x174] ss:$8 sps:$4 sm:$0xff]   ;;  %v1431_v3 = vld [vmem:[%s2113_s1 + $0x170] ss:$8 sps:$4 sm:$0xff]   ;;  %v1434_v5 = vld [vmem:[%s2113_s1 + $0x60] ss:$8 sps:$4 sm:$0xff]  }
   0x3   :  { %653 = vmatpush1.bf16.msra.mxu0 %v1428_v1  ;;  %693 = vmatprep.subr.bf16.mxu1 %v1429_v2  ;;  %v1435_v6 = vld [vmem:[%s2113_s1 + $0x164] ss:$8 sps:$4 sm:$0xff]   ;;  %v1437_v7 = vld [vmem:[%s2113_s1 + $0x160] ss:$8 sps:$4 sm:$0xff]   ;;  %v1438_v8 = vld [vmem:[%s2113_s1 + $0x54] ss:$8 sps:$4 sm:$0xff]  }
   0x4   :  { %694 = vmatpush1.bf16.msra.mxu1 %v1431_v3  ;;  %654 = vmatprep.subr.bf16.mxu0 %v1432_v4  ;;  %v1440_v9 = vld [vmem:[%s2113_s1 + $0x50] ss:$8 sps:$4 sm:$0xff]   ;;  %v1441_v10 = vld [vmem:[%s2113_s1 + $0x154] ss:$8 sps:$4 sm:$0xff]   ;;  %v1444_v11 = vld [vmem:[%s2113_s1 + $0x44] ss:$8 sps:$4 sm:$0xff]  }
   0x5   :  { %695 = vmatprep.subr.bf16.mxu1 %v1435_v6  ;;  %v1443_v12 = vld [vmem:[%s2113_s1 + $0x150] ss:$8 sps:$4 sm:$0xff]   ;;  %v1447_v13 = vld [vmem:[%s2113_s1 + $0x144] ss:$8 sps:$4 sm:$0xff]   ;;  %v1446_v14 = vld [vmem:[%s2113_s1 + $0x40] ss:$8 sps:$4 sm:$0xff]  }
   0x6   :  { %v1450_v15 = vld [vmem:[%s2113_s1 + $0x34] ss:$8 sps:$4 sm:$0xff]   ;;  %v1449_v16 = vld [vmem:[%s2113_s1 + $0x140] ss:$8 sps:$4 sm:$0xff]   ;;  %v1452_v18 = vld [vmem:[%s2113_s1 + $0x30] ss:$8 sps:$4 sm:$0xff]  }
   0x7   :  { %655 = vmatpush1.bf16.msra.mxu0 %v1434_v5  ;;  %v1453_v17 = vld [vmem:[%s2113_s1 + $0x134] ss:$8 sps:$4 sm:$0xff]   ;;  %v1456_v19 = vld [vmem:[%s2113_s1 + $0x24] ss:$8 sps:$4 sm:$0xff]   ;;  %v1455_v20 = vld [vmem:[%s2113_s1 + $0x130] ss:$8 sps:$4 sm:$0xff]  }
   0x8   :  { %656 = vmatprep.subr.bf16.mxu0 %v1438_v8  ;;  %696 = vmatpush1.bf16.msra.mxu1 %v1437_v7  ;;  %v1459_v21 = vld [vmem:[%s2113_s1 + $0x124] ss:$8 sps:$4 sm:$0xff]   ;;  %v1458_v22 = vld [vmem:[%s2113_s1 + $0x20] ss:$8 sps:$4 sm:$0xff]   ;;  %v1462_v23 = vld [vmem:[%s2113_s1 + $0x14] ss:$8 sps:$4 sm:$0xff]  }
   0x9   :  { %697 = vmatprep.subr.bf16.mxu1 %v1441_v10  ;;  %v1461_v24 = vld [vmem:[%s2113_s1 + $0x120] ss:$8 sps:$4 sm:$0xff]   ;;  %v1465_v25 = vld [vmem:[%s2113_s1 + $0x114] ss:$8 sps:$4 sm:$0xff]   ;;  %v1464_v26 = vld [vmem:[%s2113_s1 + $0x10] ss:$8 sps:$4 sm:$0xff]  }
   0xa   :  { %v1468_v27 = vld [vmem:[%s2113_s1 + $0x4] ss:$8 sps:$4 sm:$0xff]   ;;  %v1467_v28 = vld [vmem:[%s2113_s1 + $0x110] ss:$8 sps:$4 sm:$0xff]   ;;  %v1470_v30 = vld [vmem:[%s2113_s1] ss:$8 sps:$4 sm:$0xff]  }
   0xb   :  { %657 = vmatpush1.bf16.msra.mxu0 %v1440_v9  ;;  %v1471_v29 = vld [vmem:[%s2113_s1 + $0x104] ss:$8 sps:$4 sm:$0xff]   ;;  %v1474_v31 = vld [vmem:[%s2113_s1 + $0xf4] ss:$8 sps:$4 sm:$0xff]   ;;  %v1473_v32 = vld [vmem:[%s2113_s1 + $0x100] ss:$8 sps:$4 sm:$0xff]  }
   0xc   :  { %658 = vmatprep.subr.bf16.mxu0 %v1444_v11  ;;  %698 = vmatpush1.bf16.msra.mxu1 %v1443_v12  ;;  %v1477_v33 = vld [vmem:[%s2113_s1 + $0x1f4] ss:$8 sps:$4 sm:$0xff]   ;;  %v1476_v34 = vld [vmem:[%s2113_s1 + $0xf0] ss:$8 sps:$4 sm:$0xff]   ;;  %v1480_v35 = vld [vmem:[%s2113_s1 + $0xe4] ss:$8 sps:$4 sm:$0xff]  }
   0xd   :  { %699 = vmatprep.subr.bf16.mxu1 %v1447_v13  ;;  %v1479_v36 = vld [vmem:[%s2113_s1 + $0x1f0] ss:$8 sps:$4 sm:$0xff]   ;;  %v1483_v37 = vld [vmem:[%s2113_s1 + $0x1e4] ss:$8 sps:$4 sm:$0xff]   ;;  %v1482_v38 = vld [vmem:[%s2113_s1 + $0xe0] ss:$8 sps:$4 sm:$0xff]  }
   0xe   :  { %v1486_v39 = vld [vmem:[%s2113_s1 + $0xd4] ss:$8 sps:$4 sm:$0xff]   ;;  %v1485_v40 = vld [vmem:[%s2113_s1 + $0x1e0] ss:$8 sps:$4 sm:$0xff]   ;;  %v1488_v42 = vld [vmem:[%s2113_s1 + $0xd0] ss:$8 sps:$4 sm:$0xff]  }
   0xf   :  { %659 = vmatpush1.bf16.msra.mxu0 %v1446_v14  ;;  %v1489_v41 = vld [vmem:[%s2113_s1 + $0x1d4] ss:$8 sps:$4 sm:$0xff]   ;;  %v1492_v43 = vld [vmem:[%s2113_s1 + $0xc4] ss:$8 sps:$4 sm:$0xff]   ;;  %v1491_v44 = vld [vmem:[%s2113_s1 + $0x1d0] ss:$8 sps:$4 sm:$0xff]  }
  0x10   :  { %660 = vmatprep.subr.bf16.mxu0 %v1450_v15  ;;  %700 = vmatpush1.bf16.msra.mxu1 %v1449_v16  ;;  %v1495_v45 = vld [vmem:[%s2113_s1 + $0x1c4] ss:$8 sps:$4 sm:$0xff]   ;;  %v1494_v47 = vld [vmem:[%s2113_s1 + $0xc0] ss:$8 sps:$4 sm:$0xff]   ;;  %v1498_v49 = vld [vmem:[%s2113_s1 + $0xb4] ss:$8 sps:$4 sm:$0xff]  }
  0x11   :  { %701 = vmatprep.subr.bf16.mxu1 %v1453_v17  ;;  %v35_v46 = vld [vmem:[%s2112_s0 + $0x8] sm:$0xff]  ;;  %v37_v50 = vld [vmem:[%s2112_s0 + $0x18] sm:$0xff]  ;;  %v34_v4 = vld [vmem:[%s2112_s0] sm:$0xff] }
  0x12   :  { %v42_v48 = vpack.c.bf16 %v35_v46, %v35_v46  ;;  %v1497_v51 = vld [vmem:[%s2113_s1 + $0x1c0] ss:$8 sps:$4 sm:$0xff]   ;;  %v44_v52 = vpack.c.bf16 %v37_v50, %v37_v50  ;;  %v1501_v53 = vld [vmem:[%s2113_s1 + $0x1b4] ss:$8 sps:$4 sm:$0xff]   ;;  %v1500_v54 = vld [vmem:[%s2113_s1 + $0xb0] ss:$8 sps:$4 sm:$0xff]   ;;  %v41_v7 = vpack.c.bf16 %v34_v4, %v34_v4 }
  0x13   :  { %661 = vmatpush1.bf16.msra.mxu0 %v1452_v18  ;;  %v1504_v55 = vld [vmem:[%s2113_s1 + $0xa4] ss:$8 sps:$4 sm:$0xff]   ;;  %v1503_v56 = vld [vmem:[%s2113_s1 + $0x1b0] ss:$8 sps:$4 sm:$0xff]   ;;  %v1506_v58 = vld [vmem:[%s2113_s1 + $0xa0] ss:$8 sps:$4 sm:$0xff]  }
  0x14   :  { %662 = vmatprep.subr.bf16.mxu0 %v1456_v19  ;;  %702 = vmatpush1.bf16.msra.mxu1 %v1455_v20  ;;  %v1507_v57 = vld [vmem:[%s2113_s1 + $0x1a4] ss:$8 sps:$4 sm:$0xff]   ;;  %v1510_v59 = vld [vmem:[%s2113_s1 + $0x94] ss:$8 sps:$4 sm:$0xff]   ;;  %v1509_v60 = vld [vmem:[%s2113_s1 + $0x1a0] ss:$8 sps:$4 sm:$0xff]  }
  0x15   :  { %703 = vmatprep.subr.bf16.mxu1 %v1459_v21  ;;  %684 = vmatprep.mubr.bf16.mxu0 %v42_v48  ;;  %v1513_v61 = vld [vmem:[%s2113_s1 + $0x194] ss:$8 sps:$4 sm:$0xff]   ;;  %v1512_v62 = vld [vmem:[%s2113_s1 + $0x90] ss:$8 sps:$4 sm:$0xff]   ;;  %v1516_v63 = vld [vmem:[%s2113_s1 + $0x84] ss:$8 sps:$4 sm:$0xff]  }
  0x16   :  { %725 = vmatprep.mubr.bf16.mxu1 %v44_v52  ;;  %v1515_v0 = vld [vmem:[%s2113_s1 + $0x190] ss:$8 sps:$4 sm:$0xff]   ;;  %v1518_v1 = vld [vmem:[%s2113_s1 + $0x80] ss:$8 sps:$4 sm:$0xff]   ;;  %v1519_v2 = vld [vmem:[%s2113_s1 + $0x184] ss:$8 sps:$4 sm:$0xff]  }
  0x17   :  { %663 = vmatpush1.bf16.msra.mxu0 %v1458_v22  ;;  %v1521_v3 = vld [vmem:[%s2113_s1 + $0x180] ss:$8 sps:$4 sm:$0xff]   ;;  %v1524_v5 = vld [vmem:[%s2113_s1 + $0x274] ss:$8 sps:$4 sm:$0xff]   ;;  %v1522_v8 = vld [vmem:[%s2113_s1 + $0x270] ss:$8 sps:$4 sm:$0xff]  }
  0x18   :  { %664 = vmatprep.subr.bf16.mxu0 %v1462_v23  ;;  %704 = vmatpush1.bf16.msra.mxu1 %v1461_v24  ;;  %v36_v6 = vld [vmem:[%s2112_s0 + $0x10] sm:$0xff]  ;;  %v1527_v9 = vld [vmem:[%s2113_s1 + $0x264] ss:$8 sps:$4 sm:$0xff]   ;;  %v1567_v11 = vld [vmem:[%s2113_s1 + $0x300] ss:$8 sps:$4 sm:$0xff]   ;;  %v1627_v19 = vmov 0  }
  0x19   :  { %705 = vmatprep.subr.bf16.mxu1 %v1465_v25  ;;  %v43_v10 = vpack.c.bf16 %v36_v6, %v36_v6  ;;  %v1569_v12 = vld [vmem:[%s2113_s1 + $0x304] ss:$8 sps:$4 sm:$0xff]   ;;  %v1525_v13 = vld [vmem:[%s2113_s1 + $0x260] ss:$8 sps:$4 sm:$0xff]   ;;  %v1530_v14 = vld [vmem:[%s2113_s1 + $0x254] ss:$8 sps:$4 sm:$0xff]  }
  0x1a   :  { %v40_v15 = vld [vmem:[%s2112_s0 + $0x30] sm:$0xff]  ;;  %v39_v16 = vld [vmem:[%s2112_s0 + $0x28] sm:$0xff] }
  0x1b   :  { %665 = vmatpush1.bf16.msra.mxu0 %v1464_v26  ;;  %v46_v17 = vpack.c.bf16 %v39_v16, %v39_v16  ;;  %v1528_v18 = vld [vmem:[%s2113_s1 + $0x250] ss:$8 sps:$4 sm:$0xff]   ;;  %v1533_v20 = vld [vmem:[%s2113_s1 + $0x244] ss:$8 sps:$4 sm:$0xff]   ;;  %v47_v21 = vpack.c.bf16 %v40_v15, %v40_v15  ;;  %v1531_v22 = vld [vmem:[%s2113_s1 + $0x240] ss:$8 sps:$4 sm:$0xff]  }
  0x1c   :  { %666 = vmatprep.subr.bf16.mxu0 %v1468_v27  ;;  %706 = vmatpush1.bf16.msra.mxu1 %v1467_v28  ;;  %v1536_v23 = vld [vmem:[%s2113_s1 + $0x234] ss:$8 sps:$4 sm:$0xff]   ;;  %v1534_v24 = vld [vmem:[%s2113_s1 + $0x230] ss:$8 sps:$4 sm:$0xff]   ;;  %v1539_v25 = vld [vmem:[%s2113_s1 + $0x224] ss:$8 sps:$4 sm:$0xff]  }
  0x1d   :  { %707 = vmatprep.subr.bf16.mxu1 %v1471_v29  ;;  %v1537_v26 = vld [vmem:[%s2113_s1 + $0x220] ss:$8 sps:$4 sm:$0xff]   ;;  %v1542_v27 = vld [vmem:[%s2113_s1 + $0x214] ss:$8 sps:$4 sm:$0xff]  }
  0x1f   :  { %667 = vmatpush1.bf16.msra.mxu0 %v1470_v30 }
  0x20   :  { %668 = vmatprep.subr.bf16.mxu0 %v1474_v31  ;;  %708 = vmatpush1.bf16.msra.mxu1 %v1473_v32 }
  0x21   :  { %709 = vmatprep.subr.bf16.mxu1 %v1477_v33 }
  0x23   :  { %669 = vmatpush2.bf16.msra.mxu0 %v1476_v34 }
  0x24   :  { %670 = vmatprep.subr.bf16.mxu0 %v1480_v35  ;;  %710 = vmatpush2.bf16.msra.mxu1 %v1479_v36 }
  0x25   :  { %711 = vmatprep.subr.bf16.mxu1 %v1483_v37 }
  0x27   :  { %671 = vmatpush2.bf16.msra.mxu0 %v1482_v38 }
  0x28   :  { %672 = vmatprep.subr.bf16.mxu0 %v1486_v39  ;;  %712 = vmatpush2.bf16.msra.mxu1 %v1485_v40 }
  0x29   :  { %713 = vmatprep.subr.bf16.mxu1 %v1489_v41 }
  0x2b   :  { %673 = vmatpush2.bf16.msra.mxu0 %v1488_v42 }
  0x2c   :  { %674 = vmatprep.subr.bf16.mxu0 %v1492_v43  ;;  %714 = vmatpush2.bf16.msra.mxu1 %v1491_v44 }
  0x2d   :  { %715 = vmatprep.subr.bf16.mxu1 %v1495_v45 }
  0x2f   :  { %675 = vmatpush2.bf16.msra.mxu0 %v1494_v47 }
  0x30   :  { %676 = vmatprep.subr.bf16.mxu0 %v1498_v49  ;;  %716 = vmatpush2.bf16.msra.mxu1 %v1497_v51 }
  0x31   :  { %717 = vmatprep.subr.bf16.mxu1 %v1501_v53 }
  0x33   :  { %677 = vmatpush2.bf16.msra.mxu0 %v1500_v54 }
  0x34   :  { %678 = vmatprep.subr.bf16.mxu0 %v1504_v55  ;;  %718 = vmatpush2.bf16.msra.mxu1 %v1503_v56 }
  0x35   :  { %719 = vmatprep.subr.bf16.mxu1 %v1507_v57 }
  0x37   :  { %679 = vmatpush2.bf16.msra.mxu0 %v1506_v58 }
  0x38   :  { %680 = vmatprep.subr.bf16.mxu0 %v1510_v59  ;;  %720 = vmatpush2.bf16.msra.mxu1 %v1509_v60 }
  0x39   :  { %721 = vmatprep.subr.bf16.mxu1 %v1513_v61 }
  0x3b   :  { %681 = vmatpush2.bf16.msra.mxu0 %v1512_v62 }
  0x3c   :  { %682 = vmatprep.subr.bf16.mxu0 %v1516_v63  ;;  %722 = vmatpush2.bf16.msra.mxu1 %v1515_v0 }
  0x3d   :  { %723 = vmatprep.subr.bf16.mxu1 %v1519_v2 }
  0x3f   :  { %683 = vmatpush2.bf16.msra.mxu0 %v1518_v1 }
  0x40   :  { %734 = vmatprep.subr.bf16.mxu0 %v1524_v5  ;;  %724 = vmatpush2.bf16.msra.mxu1 %v1521_v3 }
  0x41   :  { %789 = vmatprep.subr.bf16.mxu1 %v1569_v12 }
  0x42   :  { %685 = vmatmul.mubr.bf16.vlgmr.msra.gmra.mxu0 %v41_v7 }
  0x43   :  { %735 = vmatpush1.bf16.msra.mxu0 %v1522_v8  ;;  %726 = vmatmul.mubr.bf16.vlgmr.msra.gmra.mxu1 %v43_v10 }
  0x44   :  { %736 = vmatprep.subr.bf16.mxu0 %v1527_v9  ;;  %790 = vmatpush1.bf16.msra.mxu1 %v1567_v11 }
  0x45   :  { %807 = vmatprep.mubr.bf16.mxu1 %v1627_v19  ;;  %766 = vmatprep.mubr.bf16.mxu0 %v46_v17 }
  0x47   :  { %737 = vmatpush1.bf16.msra.mxu0 %v1525_v13 }
  0x48   :  { %738 = vmatprep.subr.bf16.mxu0 %v1530_v14 }
  0x4b   :  { %739 = vmatpush1.bf16.msra.mxu0 %v1528_v18  ;;  %1321 = vmatmul.mubr.msk.bf16.vlgmr.msra.gmra.mxu1 %vm648_vm0, %v47_v21 }
  0x4c   :  { %740 = vmatprep.subr.bf16.mxu0 %v1533_v20 }
  0x4f   :  { %741 = vmatpush1.bf16.msra.mxu0 %v1531_v22 }
  0x50   :  { %742 = vmatprep.subr.bf16.mxu0 %v1536_v23 }
  0x53   :  { %743 = vmatpush1.bf16.msra.mxu0 %v1534_v24 }
  0x54   :  { %744 = vmatprep.subr.bf16.mxu0 %v1539_v25 }
  0x55   :  { %14 = vsyncpa [#allocation3], 0  ;;  %v1540_v28 = vld [vmem:[%s2113_s1 + $0x210] ss:$8 sps:$4 sm:$0xff]   ;;  %v1545_v29 = vld [vmem:[%s2113_s1 + $0x204] ss:$8 sps:$4 sm:$0xff]   ;;  %v148_v14 = vlaneseq }
  0x56   :  { %v1543_v30 = vld [vmem:[%s2113_s1 + $0x200] ss:$8 sps:$4 sm:$0xff]   ;;  %v1548_v31 = vld [vmem:[%s2113_s1 + $0x2f4] ss:$8 sps:$4 sm:$0xff]   ;;  %v1546_v32 = vld [vmem:[%s2113_s1 + $0x2f0] ss:$8 sps:$4 sm:$0xff]  }
  0x57   :  { %745 = vmatpush1.bf16.msra.mxu0 %v1537_v26  ;;  %v1551_v33 = vld [vmem:[%s2113_s1 + $0x2e4] ss:$8 sps:$4 sm:$0xff]   ;;  %v1549_v34 = vld [vmem:[%s2113_s1 + $0x2e0] ss:$8 sps:$4 sm:$0xff]   ;;  %v1554_v35 = vld [vmem:[%s2113_s1 + $0x2d4] ss:$8 sps:$4 sm:$0xff]  }
  0x58   :  { %746 = vmatprep.subr.bf16.mxu0 %v1542_v27  ;;  %v1552_v36 = vld [vmem:[%s2113_s1 + $0x2d0] ss:$8 sps:$4 sm:$0xff]   ;;  %v1557_v37 = vld [vmem:[%s2113_s1 + $0x2c4] ss:$8 sps:$4 sm:$0xff]   ;;  %v1555_v38 = vld [vmem:[%s2113_s1 + $0x2c0] ss:$8 sps:$4 sm:$0xff]  }
  0x59   :  { %v1560_v39 = vld [vmem:[%s2113_s1 + $0x2b4] ss:$8 sps:$4 sm:$0xff]   ;;  %v1558_v40 = vld [vmem:[%s2113_s1 + $0x2b0] ss:$8 sps:$4 sm:$0xff]   ;;  %v1563_v41 = vld [vmem:[%s2113_s1 + $0x2a4] ss:$8 sps:$4 sm:$0xff]  }
  0x5a   :  { %v1561_v42 = vld [vmem:[%s2113_s1 + $0x2a0] ss:$8 sps:$4 sm:$0xff]   ;;  %v1566_v43 = vld [vmem:[%s2113_s1 + $0x294] ss:$8 sps:$4 sm:$0xff]   ;;  %v1564_v44 = vld [vmem:[%s2113_s1 + $0x290] ss:$8 sps:$4 sm:$0xff]  }
  0x5b   :  { %747 = vmatpush1.bf16.msra.mxu0 %v1540_v28  ;;  %v1572_v45 = vld [vmem:[%s2113_s1 + $0x284] ss:$8 sps:$4 sm:$0xff]   ;;  %v1570_v46 = vld [vmem:[%s2113_s1 + $0x280] ss:$8 sps:$4 sm:$0xff]   ;;  %v1573_v49 = vld [vmem:[%s2115_s3 + $0x78] sm:$0xff]   ;;  %v1628_v1 = vmov 0.0  }
  0x5c   :  { %748 = vmatprep.subr.bf16.mxu0 %v1545_v29  ;;  %v38_v47 = vld [vmem:[%s2112_s0 + $0x20] sm:$0xff]  ;;  %v1574_v50 = vld [vmem:[%s2115_s3 + $0x38] sm:$0xff]   ;;  %v1575_v51 = vld [vmem:[%s2115_s3 + $0x70] sm:$0xff]   ;;  %1354 = vmatprep.subr.bf16.mxu1 %v1573_v49  ;;  %v149_v15 = vshrl.u32 %v148_v14, 7  ;;  %vm1629_vm1 = vmmov 0   ;;  %vm1149_vm2 = vcmask 523264  }
  0x5d   :  { %v45_v48 = vpack.c.bf16 %v38_v47, %v38_v47  ;;  %1355 = vmatpush3.bf16.msra.mxu1 %v1574_v50  ;;  %v1576_v52 = vld [vmem:[%s2115_s3 + $0x30] sm:$0xff]   ;;  %v1577_v53 = vld [vmem:[%s2115_s3 + $0x68] sm:$0xff]   ;;  %v1579_v55 = vld [vmem:[%s2115_s3 + $0x60] sm:$0xff]   ;;  %vm1207_vm4 = vcmask 80896  }
  0x5e   :  { %1356 = vmatprep.subr.bf16.mxu1 %v1575_v51  ;;  %v1578_v54 = vld [vmem:[%s2115_s3 + $0x28] sm:$0xff]   ;;  %v1580_v56 = vld [vmem:[%s2115_s3 + $0x20] sm:$0xff]   ;;  %v1581_v57 = vld [vmem:[%s2115_s3 + $0x58] sm:$0xff]   ;;  %v150_v16 = vsub.s32 0, %v149_v15  ;;  %v154_v18 = vsub.s32 1, %v149_v15 }
  0x5f   :  { %749 = vmatpush1.bf16.msra.mxu0 %v1543_v30  ;;  %v1582_v58 = vld [vmem:[%s2115_s3 + $0x18] sm:$0xff]   ;;  %v1583_v59 = vld [vmem:[%s2115_s3 + $0x50] sm:$0xff]   ;;  %v1585_v61 = vld [vmem:[%s2115_s3 + $0x48] sm:$0xff]  }
  0x60   :  { %750 = vmatprep.subr.bf16.mxu0 %v1548_v31  ;;  %v1584_v60 = vld [vmem:[%s2115_s3 + $0x10] sm:$0xff]   ;;  %v1586_v62 = vld [vmem:[%s2115_s3 + $0x8] sm:$0xff]   ;;  %v1587_v63 = vld [vmem:[%s2115_s3 + $0x40] sm:$0xff]  }
  0x61   :  { %1357 = vmatpush3.bf16.msra.mxu1 %v1576_v52  ;;  %v1588_v0 = vld [vmem:[%s2115_s3] sm:$0xff]  }
  0x62   :  { %1358 = vmatprep.subr.bf16.mxu1 %v1577_v53  ;;  %v146_v17 = vld [vmem:[%s2114_s2] sm:$0x3] }
  0x63   :  { %751 = vmatpush2.bf16.msra.mxu0 %v1546_v32  ;;  %v151_v19 = vrot.slane %v146_v17, %v150_v16  ;;  %v155_v20 = vrot.slane %v146_v17, %v154_v18 }
  0x64   :  { %752 = vmatprep.subr.bf16.mxu0 %v1551_v33 }
  0x65   :  { %1359 = vmatpush3.bf16.msra.mxu1 %v1578_v54 }
  0x66   :  { %1360 = vmatprep.subr.bf16.mxu1 %v1579_v55 }
  0x67   :  { %753 = vmatpush2.bf16.msra.mxu0 %v1549_v34 }
  0x68   :  { %754 = vmatprep.subr.bf16.mxu0 %v1554_v35 }
  0x69   :  { %1361 = vmatpush3.bf16.msra.mxu1 %v1580_v56  ;;  %v1599_v56 = vld [vmem:[%s2119_s7 + $0x8] sm:$0xff]  }
  0x6a   :  { %1362 = vmatprep.subr.bf16.mxu1 %v1581_v57  ;;  %v1600_v57 = vld [vmem:[%s2119_s7] sm:$0xff]  }
  0x6b   :  { %755 = vmatpush2.bf16.msra.mxu0 %v1552_v36  ;;  %v1589_v36 = vld [vmem:[%s2117_s5 + $0x38] sm:$0xff]  }
  0x6c   :  { %756 = vmatprep.subr.bf16.mxu0 %v1557_v37 }
  0x6d   :  { %1363 = vmatpush3.bf16.msra.mxu1 %v1582_v58  ;;  %v1339_v58 = vld [vmem:[%s2118_s6] ss:$0 sm:$0xff]  ;;  %s1630_s6 = smov [#allocation2]  }
  0x6e   :  { %1364 = vmatprep.subr.bf16.mxu1 %v1583_v59 }
  0x6f   :  { %757 = vmatpush2.bf16.msra.mxu0 %v1555_v38  ;;  %v1590_v38 = vld [vmem:[%s2117_s5 + $0x30] sm:$0xff]  }
  0x70   :  { %758 = vmatprep.subr.bf16.mxu0 %v1560_v39  ;;  %v1591_v39 = vld [vmem:[%s2117_s5 + $0x28] sm:$0xff]  }
  0x71   :  { %1365 = vmatpush3.bf16.msra.mxu1 %v1584_v60 }
  0x72   :  { %1366 = vmatprep.subr.bf16.mxu1 %v1585_v61 }
  0x73   :  { %759 = vmatpush2.bf16.msra.mxu0 %v1558_v40  ;;  %v1592_v40 = vld [vmem:[%s2117_s5 + $0x20] sm:$0xff]  }
  0x74   :  { %760 = vmatprep.subr.bf16.mxu0 %v1563_v41  ;;  %v1593_v41 = vld [vmem:[%s2117_s5 + $0x18] sm:$0xff]  }
  0x75   :  { %1367 = vmatpush3.bf16.msra.mxu1 %v1586_v62 }
  0x76   :  { %1368 = vmatprep.subr.bf16.mxu1 %v1587_v63 }
  0x77   :  { %761 = vmatpush2.bf16.msra.mxu0 %v1561_v42  ;;  %v1594_v42 = vld [vmem:[%s2117_s5 + $0x10] sm:$0xff]  }
  0x78   :  { %762 = vmatprep.subr.bf16.mxu0 %v1566_v43  ;;  %v1595_v43 = vld [vmem:[%s2117_s5 + $0x8] sm:$0xff]  }
  0x79   :  { %1369 = vmatpush3.bf16.msra.mxu1 %v1588_v0 }
  0x7a   :  { %1390 = vmatprep.subr.bf16.mxu1 %v1628_v1 }
  0x7b   :  { %763 = vmatpush2.bf16.msra.mxu0 %v1564_v44  ;;  %v1596_v44 = vld [vmem:[%s2117_s5] sm:$0xff]  }
  0x7c   :  { %764 = vmatprep.subr.bf16.mxu0 %v1572_v45  ;;  %v1597_v45 = vld [vmem:[%s2119_s7 + $0x18] sm:$0xff]  }
  0x7f   :  { %765 = vmatpush2.bf16.msra.mxu0 %v1570_v46  ;;  %v1598_v46 = vld [vmem:[%s2119_s7 + $0x10] sm:$0xff]   ;;  %s1215_s7 = sshll.u32 %s1630_s6, 4  ;;  %s1216_s7 = int_to_ptr.vmem [resolvable:$true] %s1215_s7 }
  0x80   :  { %1410 = vmatprep.subr.bf16.mxu0 %v1628_v1  ;;  %p1610_p1 = scmp.lt.s32.totalorder %s1216_s7, %s1216_s7 }
  0x82   :  { %767 = vmatmul.mubr.bf16.vlgmr.msra.gmra.mxu0 %v45_v48  ;;  %v1322_v48 = vld [vmem:[%s2116_s4] ss:$0 sm:$0xff] }
  0x83   :  { %1418 = vmatprep.mubr.msk.bf16.mxu0 %vm1629_vm1, %v1628_v1  ;;  %1411 = vmatpush3.bf16.msra.mxu0 %v1597_v45 }
  0x84   :  { %1412 = vmatprep.subr.bf16.mxu0 %v1628_v1 }
  0x87   :  { %1413 = vmatpush3.bf16.msra.mxu0 %v1598_v46 }
  0x88   :  { %1414 = vmatprep.subr.bf16.mxu0 %v1628_v1 }
  0x8b   :  { %1415 = vmatpush3.bf16.msra.mxu0 %v1599_v56 }
  0x8c   :  { %1416 = vmatprep.subr.bf16.mxu0 %v1628_v1 }
  0x8f   :  { %1417 = vmatpush3.bf16.msra.mxu0 %v1600_v57 }
 0x102   :  { %v686_v2 = vpop.f32.mrf.mxu0 }
 0x103   :  { %v727_v4 = vpop.f32.mrf.mxu1  ;;  %v687_v21 = vadd.f32 %v686_v2, %v151_v19 }
 0x104   :  { %v688_v3 = vpop.f32.mrf.mxu0 }
 0x105   :  { %v729_v6 = vpop.f32.mrf.mxu1  ;;  %v689_v22 = vadd.f32 %v688_v3, %v155_v20  ;;  %v728_v23 = vadd.f32 %v727_v4, %v687_v21  ;;  %v1348_v3 = vld [vmem:[%s2120_s8] ss:$0 sm:$0xff]  ;;  %s1605_s8 = scalar_lea.vmem %s1216_s7, 128 }
 0x106   :  { %v690_v5 = vpop.f32.mrf.mxu0  ;;  %p1606_p0 = scmp.ne.s32.totalorder %s1216_s7, %s1605_s8  ;;  %p1611_p2 = scmp.lt.s32.totalorder %s1605_s8, %s1605_s8 }
 0x107   :  { %v731_v8 = vpop.f32.mrf.mxu1  ;;  %v730_v25 = vadd.f32 %v729_v6, %v689_v22 }
 0x108   :  { %v691_v7 = vpop.f32.mrf.mxu0  ;;  %p1612_p3 = por %p1611_p2, %p1610_p1 }
 0x109   :  { %v732_v9 = vpop.f32.mrf.mxu1 }
 0x10a   :  { %p1613_p4 = pnand %p1612_p3, %p1606_p0 }
 0x10b   :  { %v809_v10 = vpop.f32.mrf.mxu1 }
 0x10d   :  { %v811_v11 = vpop.f32.mrf.mxu1 }
 0x10f   :  { %v813_v12 = vpop.f32.mrf.mxu1 }
 0x111   :  { %v814_v13 = vpop.f32.mrf.mxu1 }
 0x142   :  { %v768_v24 = vpop.f32.mrf.mxu0 }
 0x143   :  { %v769_v26 = vadd.f32 %v768_v24, %v728_v23 }
 0x144   :  { %v770_v27 = vpop.f32.mrf.mxu0 }
 0x145   :  { %v810_v28 = vadd.f32 %v809_v10, %v769_v26  ;;  %v771_v29 = vadd.f32 %v770_v27, %v730_v25 }
 0x146   :  { %v772_v30 = vpop.f32.mrf.mxu0 }
 0x147   :  { %v812_v31 = vadd.f32 %v811_v11, %v771_v29  ;;  %v816_v32 = vmax.f32 %v810_v28, 0.0 }
 0x148   :  { %v773_v33 = vpop.f32.mrf.mxu0 }
 0x149   :  { %v817_v34 = vmax.f32 %v812_v31, 0.0  ;;  %v818_v37 = vpack.c.bf16 %v816_v32, %v816_v32 }
 0x14b   :  { %v819_v35 = vpack.c.bf16 %v817_v34, %v817_v34 }
 0x14d   :  { %987 = vmatprep.mubr.bf16.mxu1 %v819_v35 }
 0x14e   :  { %988 = vmatmul.mubr.bf16.vlgmr.msra.gmra.mxu1 %v818_v37 }
 0x14f   :  { %1391 = vmatpush3.bf16.msra.mxu1 %v1589_v36  ;;  %1406 = vmatprep.mubr.msk.bf16.mxu1 %vm1629_vm1, %v1628_v1 }
 0x150   :  { %1392 = vmatprep.subr.bf16.mxu1 %v1628_v1 }
 0x153   :  { %1393 = vmatpush3.bf16.msra.mxu1 %v1590_v38 }
 0x154   :  { %1394 = vmatprep.subr.bf16.mxu1 %v1628_v1 }
 0x157   :  { %1395 = vmatpush3.bf16.msra.mxu1 %v1591_v39 }
 0x158   :  { %1396 = vmatprep.subr.bf16.mxu1 %v1628_v1 }
 0x15b   :  { %1397 = vmatpush3.bf16.msra.mxu1 %v1592_v40 }
 0x15c   :  { %1398 = vmatprep.subr.bf16.mxu1 %v1628_v1 }
 0x15f   :  { %1399 = vmatpush3.bf16.msra.mxu1 %v1593_v41 }
 0x160   :  { %1400 = vmatprep.subr.bf16.mxu1 %v1628_v1 }
 0x163   :  { %1401 = vmatpush3.bf16.msra.mxu1 %v1594_v42 }
 0x164   :  { %1402 = vmatprep.subr.bf16.mxu1 %v1628_v1 }
 0x167   :  { %1403 = vmatpush3.bf16.msra.mxu1 %v1595_v43 }
 0x168   :  { %1404 = vmatprep.subr.bf16.mxu1 %v1628_v1  ;;  %v1194_v1 = vand.u32 127, %v148_v14 }
 0x16a   :  { %vm1195_vm3 = vcmp.lt.s32.totalorder %v1194_v1, 10 }
 0x16b   :  { %1405 = vmatpush3.bf16.msra.mxu1 %v1596_v44 }
 0x20e   :  { %v1370_v47 = vpop.f32.mrf.mxu1 }
 0x210   :  { %v1371_v49 = vpop.f32.mrf.mxu1 }
 0x211   :  { %v1372_v50 = vadd.f32 %v1371_v49, %v1370_v47 }
 0x212   :  { %v1373_v51 = vpop.f32.mrf.mxu1 }
 0x213   :  { %v990_v52 = vadd.f32 %v1372_v50, %v1322_v48 }
 0x214   :  { %v1374_v53 = vpop.f32.mrf.mxu1 }
 0x215   :  { %v995_v54 = vmax.f32 %v990_v52, 0.0 }
 0x217   :  { %v996_v55 = vpack.c.bf16 %v995_v54, %v995_v54 }
 0x219   :  { %1407 = vmatmul.mubr.bf16.vlgmr.msra.gmra.mxu1 %v996_v55 }
 0x2d9   :  { %v1102_v59 = vpop.f32.mrf.mxu1 }
 0x2da   :  { %v1103_v60 = vadd.f32 %v1339_v58, %v1102_v59 }
 0x2db   :  { %v1408_v61 = vpop.f32.mrf.mxu1 }
 0x2dc   :  { %v1108_v62 = vmax.f32 %v1103_v60, 0.0 }
 0x2dd   :  { %v1105_v63 = vpop.f32.mrf.mxu1 }
 0x2de   :  { %v1109_v0 = vpack.c.bf16 %v1108_v62, %v1108_v62 }
 0x2df   :  { %v1409_v2 = vpop.f32.mrf.mxu1 }
 0x2e0   :  { %1419 = vmatmul.mubr.msk.bf16.vlgmr.msra.gmra.mxu0 %vm1149_vm2, %v1109_v0 }
 0x3a0   :  { %v1187_v4 = vpop.f32.mrf.mxu0 }
 0x3a1   :  { %v1188_v5 = vadd.f32 %v1348_v3, %v1187_v4 }
 0x3a2   :  { %v1420_v6 = vpop.f32.mrf.mxu0 }
 0x3a3   :  { %v1196_v7 = vsel %vm1195_vm3, %v1188_v5, -1e+30 }
 0x3a4   :  { %1197 = vmax.xlane.f32.xlu0 %v1196_v7  ;;  %v1190_v8 = vpop.f32.mrf.mxu0 }
 0x3a6   :  { %v1421_v9 = vpop.f32.mrf.mxu0 }
 0x42d   :  { %v1198_v10 = vpop.xlane.xlu0 %1197 }
 0x42e   :  { %v1199_v11 = vsub.f32 %v1196_v7, %v1198_v10 }
 0x430   :  { %v1200_v12 = vmul.f32 1.442695, %v1199_v11 }
 0x432   :  { %1601 = vpow2.f32 %v1200_v12 }
 0x43f   :  { %v1602_v13 = vpop.eup %1601 }
 0x440   :  { %1202 = vadd.xlane.f32.xlu0 %v1602_v13 }
 0x4c9   :  { %v1203_v15 = vpop.xlane.xlu0 %1202 }
 0x4ca   :  { %1603 = vlog2.f32 %v1203_v15 }
 0x4d7   :  { %v1604_v14 = vpop.eup %1603 }
 0x4d8   :  { %v1205_v16 = vmul.f32 0.6931472, %v1604_v14 }
 0x4da   :  { %v1206_v17 = vsub.f32 %v1199_v11, %v1205_v16 }
 0x4dc   :  { %1208 = vst.msk [vmem:[#allocation2] sm:$0xff] %vm1207_vm4, %v1206_v17 }
 0x4dd   :  { %1616 = shalt.err (!%p1613_p4)
}
 0x4de   :  { %1218 = dma.vmem_to_hbm [thread:$0]  %s1216_s7, 128, %s2121_s9, [#allocation3]  }
 0x4df   :  { %1625 = dma.done.wait [#allocation3], 128  }
 0x4e0   :  { %1626 = vsyncadd [#allocation3], 4294967168 }
 0x4e1   :  { %1222 = vsyncpa [#allocation3], 1 }

</bundles_post_ra>
